<compile_context>
chip_gen: v6e
topology: v6e:2x2x1
jax: 0.10.0
libtpu: 0.0.40
codegen_flags: <defaults>
</compile_context>

<pallas_src>
import functools

import jax
import jax.numpy as jnp
from jax.experimental import pallas as pl
from jax.experimental.pallas import tpu as pltpu

BN_EPS = 1e-5


# --------------------------------------------------------------------------
# Kernel 1: global average pool (gridded spatial reduction) + BN-neck
# --------------------------------------------------------------------------
def _pool_bn_kernel(x_ref, gamma_ref, feat_ref, bn_ref, *, inv_hw):
    # x_ref:     (N, T_C, T_HW)  one (channel, spatial) tile of the activation
    # gamma_ref: (1, T_C)        BN weight (bias frozen at 0)
    # feat_ref:  (N, T_C)        pooled (pre-BN) feature; doubles as accumulator
    # bn_ref:    (N, T_C)        BN-neck feature
    k = pl.program_id(1)

    @pl.when(k == 0)
    def _init():
        feat_ref[...] = jnp.zeros_like(feat_ref)

    # Partial spatial sum for this tile; accumulate into the resident output
    # block.  Scale by 1/HW only once, in the finalize step.
    feat_ref[...] += jnp.sum(x_ref[...].astype(jnp.float32), axis=-1)

    @pl.when(k == pl.num_programs(1) - 1)
    def _finalize():
        global_feat = feat_ref[...] * inv_hw                 # (N, T_C) avg pool
        feat_ref[...] = global_feat
        # BatchNorm1d training mode: biased batch statistics over N (per channel).
        mean = jnp.mean(global_feat, axis=0, keepdims=True)  # (1, T_C)
        centered = global_feat - mean
        var = jnp.mean(centered * centered, axis=0, keepdims=True)
        # Single fused (1, T_C) scale: rsqrt(var+eps) * gamma, computed once.
        scale = jax.lax.rsqrt(var + BN_EPS) * gamma_ref[...]
        bn_ref[...] = centered * scale


# --------------------------------------------------------------------------
# Kernel 2: linear classifier (no bias), gridded over class tiles
# --------------------------------------------------------------------------
def _classifier_kernel(bn_ref, w_ref, logits_ref):
    # bn_ref:     (N, C)    f32 BN-neck features
    # w_ref:      (T_K, C)  bf16 classifier weight tile (nn.Linear orientation)
    # logits_ref: (N, T_K)  f32 logits tile (lane-dense: T_K % 128 == 0)
    bn16 = bn_ref[...].astype(jnp.bfloat16)          # bf16 MXU operands, f32 acc
    logits_ref[...] = jax.lax.dot_general(
        bn16, w_ref[...],
        dimension_numbers=(((1,), (1,)), ((), ())),  # contract on C (trans_b)
        preferred_element_type=jnp.float32)


# --------------------------------------------------------------------------
# Tiling / VMEM helpers
# --------------------------------------------------------------------------
def _pick_lane_tile(full, requested=None, max_elems=2048):
    """Pick a lane-dim tile: multiple of 128 dividing `full`, or the full extent."""
    if requested is not None and full % requested == 0 and (
            requested % 128 == 0 or requested == full):
        return requested
    if full % 128 != 0:
        return full  # ragged dim (e.g. HW = 14*14 = 196): single full-extent tile
    t = 128
    while t * 2 <= min(full, max_elems) and full % (t * 2) == 0:
        t *= 2
    return t


def _vmem_limit(need_bytes):
    # Above the 16/32 MiB scoped defaults, safely below v7x's 64 MiB physical VMEM.
    return int(min(max(need_bytes + (4 << 20), 32 << 20), 48 << 20))


# --------------------------------------------------------------------------
# Wrapper
# --------------------------------------------------------------------------
def bnneck_head_forward(x_nchw, gamma, cls_weight, *,
                        hw_tile=None, c_tile=None, k_tile=None):
    """x_nchw: (N, C, H, W); gamma: (C,) BN weight; cls_weight: (K, C) nn.Linear.weight."""
    N, C, H, W = x_nchw.shape
    K = cls_weight.shape[0]
    HW = H * W

    # Keep x in its native dtype; the pooled sum accumulates in f32 in-kernel.
    x3 = x_nchw.reshape(N, C, HW)
    gamma2 = gamma.reshape(1, C).astype(jnp.float32)

    t_hw = _pick_lane_tile(HW, hw_tile)
    t_c = _pick_lane_tile(C, c_tile, max_elems=512)
    hw_steps = HW // t_hw
    c_steps = C // t_c

    # ---- Kernel 1: pool + BN (channel-parallel, pipelined spatial reduction) --
    need1 = (2 * N * t_c * t_hw * x3.dtype.itemsize   # double-buffered x tiles
             + 4 * N * t_c * 4 + 2 * t_c * 4)         # feat/bn blocks + gamma
    feat, bn_feat = pl.pallas_call(
        functools.partial(_pool_bn_kernel, inv_hw=float(1.0 / HW)),
        out_shape=(
            jax.ShapeDtypeStruct((N, C), jnp.float32),
            jax.ShapeDtypeStruct((N, C), jnp.float32),
        ),
        grid=(c_steps, hw_steps),
        in_specs=[
            pl.BlockSpec((N, t_c, t_hw), lambda c, k: (0, c, k)),
            pl.BlockSpec((1, t_c), lambda c, k: (0, c)),
        ],
        out_specs=(
            pl.BlockSpec((N, t_c), lambda c, k: (0, c)),
            pl.BlockSpec((N, t_c), lambda c, k: (0, c)),
        ),
        compiler_params=pltpu.CompilerParams(
            dimension_semantics=("parallel", "arbitrary"),
            vmem_limit_bytes=_vmem_limit(need1),
        ),
    )(x3, gamma2)

    # ---- Kernel 2: classifier logits ---------------------------------------
    # Pad classes to a multiple of 128 (lane-dense logits stores), keep the
    # (K, C) orientation, and store bf16 to halve weight HBM traffic and feed
    # the MXU at its bf16 rate.
    K_pad = pl.cdiv(K, 128) * 128
    w = cls_weight.astype(jnp.bfloat16)
    if K_pad != K:
        w = jnp.pad(w, ((0, K_pad - K), (0, 0)))
    t_k = _pick_lane_tile(K_pad, k_tile)
    k_steps = K_pad // t_k

    # TODO(synk): for production batches, pad N up to >=128 before this matmul
    # so the 256-row MXU is better occupied (the pooled feature is tiny).
    need2 = 2 * t_k * C * 2 + N * C * 4 + 2 * N * t_k * 4
    logits_pad = pl.pallas_call(
        _classifier_kernel,
        out_shape=jax.ShapeDtypeStruct((N, K_pad), jnp.float32),
        grid=(k_steps,),
        in_specs=[
            pl.BlockSpec((N, C), lambda j: (0, 0)),
            pl.BlockSpec((t_k, C), lambda j: (j, 0)),
        ],
        out_specs=pl.BlockSpec((N, t_k), lambda j: (0, j)),
        compiler_params=pltpu.CompilerParams(
            dimension_semantics=("parallel",),
            vmem_limit_bytes=_vmem_limit(need2),
        ),
    )(bn_feat, w)
    logits = logits_pad[:, :K]

    # For nn.Linear, cls_outputs and pred_class_logits are the same F.linear
    # (no bias), so a single matmul serves both.
    return {
        "cls_outputs": logits,
        "pred_class_logits": logits,
        "features": feat,          # NECK_FEAT == 'before' -> global_feat[..., 0, 0]
        "bn_feat": bn_feat,
    }


if __name__ == "__main__":
    key = jax.random.PRNGKey(0)
    k_x, k_w = jax.random.split(key)

    N, C, H, W = 2, 4, 16, 16       # batch, in_feat, spatial
    num_classes = 8

    x = jax.random.normal(k_x, (N, C, H, W), dtype=jnp.float32)
    gamma = jnp.ones((C,), dtype=jnp.float32)                       # weights_init_kaiming: BN weight = 1
    cls_weight = 0.001 * jax.random.normal(k_w, (num_classes, C),   # weights_init_classifier: std=0.001
                                           dtype=jnp.float32)

    # hw_tile=128 exercises the pipelined spatial grid (HW=256 -> 2 HW steps).
    out = bnneck_head_forward(x, gamma, cls_weight, hw_tile=128)
    jax.block_until_ready(out)

    # Pure-JAX reference (same math as the PyTorch module in training mode).
    gf_ref = jnp.mean(x.reshape(N, C, -1), axis=-1)
    mu = jnp.mean(gf_ref, axis=0, keepdims=True)
    var = jnp.mean((gf_ref - mu) ** 2, axis=0, keepdims=True)
    bn_ref = (gf_ref - mu) / jnp.sqrt(var + BN_EPS) * gamma[None, :]
    logits_ref = bn_ref @ cls_weight.T

    assert jnp.allclose(out["features"], gf_ref, atol=1e-5)
    assert jnp.allclose(out["bn_feat"], bn_ref, atol=1e-4)
    assert jnp.allclose(out["cls_outputs"], logits_ref, atol=1e-4)
    assert jnp.allclose(out["pred_class_logits"], logits_ref, atol=1e-4)

    print("KERNEL_OK")
</pallas_src>

<mosaic_0001>
module attributes {stable_mosaic.version = 11 : i64} {
  func.func @_pool_bn_kernel(%arg0: i32, %arg1: i32, %arg2: memref<2x4x128xf32, #tpu.memory_space<vmem>>, %arg3: memref<1x4xf32, #tpu.memory_space<vmem>>, %arg4: memref<2x4xf32, #tpu.memory_space<vmem>>, %arg5: memref<2x4xf32, #tpu.memory_space<vmem>>) attributes {dimension_semantics = [#tpu.dimension_semantics<parallel>, #tpu.dimension_semantics<arbitrary>], iteration_bounds = array<i64: 1, 2>, scalar_prefetch = 0 : i64, scratch_operands = 0 : i64, tpu.core_type = #tpu.core_type<tc>, window_params = [{transform_indices = @transform_0, window_bounds = array<i64: 2, 4, 128>}, {transform_indices = @transform_1, window_bounds = array<i64: 1, 4>}, {transform_indices = @transform_2, window_bounds = array<i64: 2, 4>}, {transform_indices = @transform_3, window_bounds = array<i64: 2, 4>}]} {
    %c0_i32 = arith.constant 0 : i32
    %0 = arith.cmpi eq, %arg1, %c0_i32 : i32
    %1 = arith.extui %0 : i1 to i32
    %c0_i32_0 = arith.constant 0 : i32
    %2 = arith.cmpi ne, %1, %c0_i32_0 : i32
    scf.if %2 {
      %cst_8 = arith.constant 0.000000e+00 : f32
      %11 = vector.broadcast %cst_8 : f32 to vector<2x4xf32>
      %c0_9 = arith.constant 0 : index
      %c0_10 = arith.constant 0 : index
      %12 = vector.load %arg4[%c0_9, %c0_10] : memref<2x4xf32, #tpu.memory_space<vmem>>, vector<2x4xf32>
      tpu.vector_store %arg4[%c0_9, %c0_10], %11 {strides = array<i32>} : memref<2x4xf32, #tpu.memory_space<vmem>>, vector<2x4xf32>,
    } else {
    }
    %c0 = arith.constant 0 : index
    %c0_1 = arith.constant 0 : index
    %3 = vector.load %arg4[%c0, %c0_1] : memref<2x4xf32, #tpu.memory_space<vmem>>, vector<2x4xf32>
    %c0_2 = arith.constant 0 : index
    %c0_3 = arith.constant 0 : index
    %c0_4 = arith.constant 0 : index
    %4 = vector.load %arg2[%c0_2, %c0_3, %c0_4] : memref<2x4x128xf32, #tpu.memory_space<vmem>>, vector<2x4x128xf32>
    %cst = arith.constant dense<0.000000e+00> : vector<2x4xf32>
    %5 = vector.multi_reduction <add>, %4, %cst [2] : vector<2x4x128xf32> to vector<2x4xf32>
    %6 = arith.addf %3, %5 : vector<2x4xf32>
    %c0_5 = arith.constant 0 : index
    %c0_6 = arith.constant 0 : index
    %7 = vector.load %arg4[%c0_5, %c0_6] : memref<2x4xf32, #tpu.memory_space<vmem>>, vector<2x4xf32>
    tpu.vector_store %arg4[%c0_5, %c0_6], %6 {strides = array<i32>} : memref<2x4xf32, #tpu.memory_space<vmem>>, vector<2x4xf32>,
    %c1_i32 = arith.constant 1 : i32
    %8 = arith.cmpi eq, %arg1, %c1_i32 : i32
    %9 = arith.extui %8 : i1 to i32
    %c0_i32_7 = arith.constant 0 : i32
    %10 = arith.cmpi ne, %9, %c0_i32_7 : i32
    scf.if %10 {
      %c0_8 = arith.constant 0 : index
      %c0_9 = arith.constant 0 : index
      %11 = vector.load %arg4[%c0_8, %c0_9] : memref<2x4xf32, #tpu.memory_space<vmem>>, vector<2x4xf32>
      %cst_10 = arith.constant 3.906250e-03 : f32
      %12 = vector.broadcast %cst_10 : f32 to vector<2x4xf32>
      %13 = arith.mulf %11, %12 : vector<2x4xf32>
      %c0_11 = arith.constant 0 : index
      %c0_12 = arith.constant 0 : index
      %14 = vector.load %arg4[%c0_11, %c0_12] : memref<2x4xf32, #tpu.memory_space<vmem>>, vector<2x4xf32>
      tpu.vector_store %arg4[%c0_11, %c0_12], %13 {strides = array<i32>} : memref<2x4xf32, #tpu.memory_space<vmem>>, vector<2x4xf32>,
      %cst_13 = arith.constant dense<0.000000e+00> : vector<4xf32>
      %15 = vector.multi_reduction <add>, %13, %cst_13 [0] : vector<2x4xf32> to vector<4xf32>
      %16 = vector.shape_cast %15 : vector<4xf32> to vector<1x4xf32>
      %cst_14 = arith.constant 2.000000e+00 : f32
      %17 = vector.broadcast %cst_14 : f32 to vector<1x4xf32>
      %18 = arith.divf %16, %17 : vector<1x4xf32>
      %19 = vector.broadcast %18 : vector<1x4xf32> to vector<2x4xf32>
      %20 = arith.subf %13, %19 : vector<2x4xf32>
      %21 = arith.mulf %20, %20 : vector<2x4xf32>
      %cst_15 = arith.constant dense<0.000000e+00> : vector<4xf32>
      %22 = vector.multi_reduction <add>, %21, %cst_15 [0] : vector<2x4xf32> to vector<4xf32>
      %23 = vector.shape_cast %22 : vector<4xf32> to vector<1x4xf32>
      %cst_16 = arith.constant 2.000000e+00 : f32
      %24 = vector.broadcast %cst_16 : f32 to vector<1x4xf32>
      %25 = arith.divf %23, %24 : vector<1x4xf32>
      %cst_17 = arith.constant 9.99999974E-6 : f32
      %26 = vector.broadcast %cst_17 : f32 to vector<1x4xf32>
      %27 = arith.addf %25, %26 : vector<1x4xf32>
      %28 = math.rsqrt %27 : vector<1x4xf32>
      %c0_18 = arith.constant 0 : index
      %c0_19 = arith.constant 0 : index
      %29 = vector.load %arg3[%c0_18, %c0_19] : memref<1x4xf32, #tpu.memory_space<vmem>>, vector<1x4xf32>
      %30 = arith.mulf %28, %29 : vector<1x4xf32>
      %31 = vector.broadcast %30 : vector<1x4xf32> to vector<2x4xf32>
      %32 = arith.mulf %20, %31 : vector<2x4xf32>
      %c0_20 = arith.constant 0 : index
      %c0_21 = arith.constant 0 : index
      %33 = vector.load %arg5[%c0_20, %c0_21] : memref<2x4xf32, #tpu.memory_space<vmem>>, vector<2x4xf32>
      tpu.vector_store %arg5[%c0_20, %c0_21], %32 {strides = array<i32>} : memref<2x4xf32, #tpu.memory_space<vmem>>, vector<2x4xf32>,
    } else {
    }
    return
  }
  func.func @transform_0(%arg0: i32, %arg1: i32) -> (i32, i32, i32) {
    %c0_i32 = arith.constant 0 : i32
    %c0_i32_0 = arith.constant 0 : i32
    return %c0_i32, %arg0, %arg1 : i32, i32, i32
  }
  func.func @transform_1(%arg0: i32, %arg1: i32) -> (i32, i32) {
    %c0_i32 = arith.constant 0 : i32
    %c0_i32_0 = arith.constant 0 : i32
    return %c0_i32, %arg0 : i32, i32
  }
  func.func @transform_2(%arg0: i32, %arg1: i32) -> (i32, i32) {
    %c0_i32 = arith.constant 0 : i32
    %c0_i32_0 = arith.constant 0 : i32
    return %c0_i32, %arg0 : i32, i32
  }
  func.func @transform_3(%arg0: i32, %arg1: i32) -> (i32, i32) {
    %c0_i32 = arith.constant 0 : i32
    %c0_i32_0 = arith.constant 0 : i32
    return %c0_i32, %arg0 : i32, i32
  }
}

</mosaic_0001>

<bundles_post_ra>
// kernel: tpu_custom_call.1
= control target key start
LH: loop header
LB: loop body
LE: loop exit
PB: predicated region body
PF: predicated region fallthrough
CT: control target
= control target key end

     0   :  { %9 = vsyncpa [#allocation3], 0  ;;  %s782_s0 = inlined_call_operand.hbm [shape: f32[2,4,256], index: 0, kind: input, shape index: {}]   ;;  %s783_s1 = inlined_call_operand.vmem [shape: f32[1,4], index: 1, kind: input, shape index: {}]   ;;  %s784_s2 = inlined_call_operand.hbm [shape: f32[2,4], index: 2, kind: output, shape index: {0}]   ;;  %s785_s3 = inlined_call_operand.hbm [shape: f32[2,4], index: 3, kind: output, shape index: {1}]  }
   0x1   :  { %11 = vsyncpa [#allocation3 + $0x1], 0 }
   0x2   :  { %12 = vsyncpa [#allocation4], 0 }
   0x3   :  { %13 = vsyncpa [#allocation7], 0  ;;  %s649_s12 = smov 0   ;;  %s651_s13 = smov 0  }
   0x4   :  { %s653_s14 = smov 0   ;;  %s655_s15 = smov 0  }
   0x5   :  { %s657_s16 = smov 0   ;;  %s659_s17 = smov 0  }
   0x6 LB: > { %s395_s18 = sadd.s32 4294967295, %s620_s17   ;;  %s28_s19 = sadd.s32 1, %s616_s16  ;;  %s620_s17 = sphi %s659_s17, %s19_s17   ;;  %s616_s16 = sphi %s657_s16, %s794_s16   ;;  %s612_s15 = sphi %s655_s15, %s793_s15   ;;  %s608_s14 = sphi %s653_s14, %s792_s14   ;;  %s604_s13 = sphi %s651_s13, %s791_s13   ;;  %s600_s12 = sphi %s649_s12, %s790_s12  }
   0x7   : > { %p29_p0 = scmp.ge.s32.totalorder %s28_s19, 2  ;;  %s40_s20 = sadd.s32 1, %s608_s14 }
   0x8   : > { %p47_p1 = scmp.ne.s32.totalorder %s608_s14, %s604_s13  ;;  %p48_p2 = scmp.eq.s32.totalorder %s620_s17, 0 }
   0x9   : > { %s796_s19 = smov (%p29_p0, %s28_s19), 0  ;;  %p53_p4 = scmp.ne.s32.totalorder %s604_s13, %s600_s12 }
   0xa   : > { %p685_p3 = por %p48_p2, %p47_p1  ;;  %s36_s22 = ssub.s32 %s616_s16, %s796_s19 }
   0xb   : > { %p54_p5 = scmp.eq.s32.totalorder %s395_s18, 0  ;;  %p38_p6 = scmp.eq.s32.totalorder %s36_s22, 0 }
   0xc   : > { %p425_p8 = scmp.lt.s32.totalorder %s620_s17, 2  ;;  %s161_s25 = sand.u32 1, %s608_s14  }
   0xd   : > { %p694_p7 = por %p54_p5, %p53_p4  ;;  %s400_s26 = sshll.u32 %s616_s16, 6 }
   0xe   : > { %s700_s24 = scalar_select %p38_p6, %s608_s14, %s40_s20  }
   0xf   : > { %s399_s27 = sshll.u32 %s161_s25, 3  ;;  %s172_s30 = scalar_lea.hbm %s782_s0, %s400_s26 }
  0x10   : > { %s165_s4 = scalar_lea.vmem [#allocation2], %s399_s27  ;;  %p709_p9 = pnand %p425_p8, %p685_p3 }
  0x11   : > { %s173_s5 = sshll.u32 %s165_s4, 4  ;;  %p401_p10 = scmp.ge.s32.totalorder %s620_s17, 1  ;;  %s174_s5 = int_to_ptr.vmem [resolvable:$true] %s173_s5 }
  0x12   : > { %s162_s7 = scalar_lea.sflag [#allocation3], %s161_s25  ;;  %p488_p11 = pneg %p709_p9 }
  0x13   : > { %s499_s8 = scalar_lea.vmem %s174_s5, 128  ;;  %s622_s9 = smov [#allocation2]  }
  0x14   : > { %p500_p12 = scmp.ne.s32.totalorder %s174_s5, %s499_s8  ;;  %s504_s10 = sshll.u32 %s622_s9, 4  ;;  %s505_s10 = int_to_ptr.vmem [resolvable:$false] %s504_s10 }
  0x15   : > { %s506_s11 = scalar_lea.vmem %s505_s10, 256  ;;  %p507_p1 = scmp.lt.s32.totalorder %s174_s5, %s505_s10 }
  0x16   : > { %p502_p13 = pnand %p500_p12, %p488_p11  ;;  %p508_p2 = scmp.lt.s32.totalorder %s506_s11, %s499_s8 }
  0x18   : > { %p503_p0 = pneg %p502_p13  ;;  %p509_p3 = por %p508_p2, %p507_p1 }
  0x1a   : > { %p510_p4 = pnand %p509_p3, %p503_p0 }
  0x1c   : > { %513 = shalt.err (!%p510_p4)
}
  0x1d   : > { %s623_s12 = smov 128   ;;  %s624_s20 = smov 64  }
  0x1e   : > { %s625_s21 = smov 4   ;;  %p181_p5 = scmp.lt.s32.totalorder %s620_s17, 3 }
  0x1f   : > { %424 = dma.hbm_to_vmem [thread:$0]  (!%p709_p9), %s172_s30, 128, %s174_s5, %s162_s7, %s623_s12, %s624_s20, %s625_s21  }
  0x20   : > { %p182_p6 = pnand %p401_p10, %p181_p5 }
  0x21   : > { %s187_s22 = sand.u32 (!%p182_p6), 1, %s604_s13  }
  0x22   : > { %185 = sbr.rel (%p182_p6) target bundleno = 293 (0x125), region = 28  ;;  %s402_s25 = sshll.u32 (!%p182_p6), %s187_s22, 3 }
  0x23   : > { %s188_s26 = scalar_lea.sflag (!%p182_p6), [#allocation3], %s187_s22  ;;  %s191_s27 = scalar_lea.vmem (!%p182_p6), [#allocation2], %s402_s25 }
  0x27   : > { %587 = dma.done.wait (%p694_p7), %s188_s26, 128  }
  0x28   : > { %589 = vsyncadd (%p694_p7), %s188_s26, 4294967168  ;;  %p403_p8 = scmp.ne.s32.totalorder %s612_s15, 0 }
  0x2a   : > { %218 = sbr.rel (%p403_p8) target bundleno = 49 (0x31), region = 36 }
  0x2f   : > { %vm219_vm0 = vcmask 25600   ;;  %v626_v0 = vmov 0.0  }
  0x30   : > { %220 = vst.msk [vmem:[#allocation5] sm:$0x3] %vm219_vm0, %v626_v0 }
  0x31 PF: > { %v222_v1 = vld [vmem:[%s191_s27] sm:$0xf]  ;;  %vm224_vm1 = vcmask 1043456   ;;  %v223_v2 = vld [vmem:[%s191_s27 + $0x4] sm:$0xf]  ;;  %v233_v5 = vlaneseq  ;;  %vm243_vm2 = vcmask 1041409  }
  0x32   : > { %v225_v3 = vsel %vm224_vm1, %v222_v1, 0.0  ;;  %v228_v4 = vsel %vm224_vm1, %v223_v2, 0.0  ;;  %vm247_vm3 = vcmask 25600   ;;  %p404_p7 = scmp.ne.s32.totalorder %s612_s15, 1 }
  0x33   : > { %226 = vadd.xlane.f32.xlu0 %v225_v3  ;;  %v234_v6 = vand.u32 127, %v233_v5  ;;  %v236_v7 = vshrl.u32 %v233_v5, 7 }
  0x35   : > { %v237_v9 = vsub.s32 %v234_v6, %v236_v7 }
  0x37   : > { %229 = vadd.xlane.f32.xlu0 %v228_v4  ;;  %v221_v12 = vld [vmem:[#allocation5] sm:$0x3] }
  0xbc   : > { %v227_v8 = vpop.xlane.xlu0 %226 }
  0xbd   : > { %v238_v11 = vrot.slane %v227_v8, %v237_v9 }
  0xc0   : > { %v230_v10 = vpop.xlane.xlu0 %229 }
  0xc1   : > { %v242_v13 = vrot.slane %v230_v10, %v237_v9 }
  0xc2   : > { %252 = sbr.rel (%p404_p7) target bundleno = 265 (0x109), region = 40 }
  0xc3   : > { %v244_v14 = vsel %vm243_vm2, %v242_v13, %v238_v11 }
  0xc4   : > { %v246_v15 = vadd.f32 %v244_v14, %v221_v12 }
  0xc6   : > { %248 = vst.msk [vmem:[#allocation5] sm:$0x3] %vm247_vm3, %v246_v15 }
  0xc7   : > { %v277_v37 = vld [vmem:[%s783_s1] sm:$0x1]  ;;  %v281_v38 = vsub.s32 0, %v236_v7 }
  0xcd   : > { %v253_v16 = vld [vmem:[#allocation5] sm:$0x3] }
  0xce   : > { %v254_v17 = vmul.f32 0.00390625, %v253_v16 }
  0xd0   : > { %255 = vst.msk [vmem:[#allocation5] sm:$0x3] %vm247_vm3, %v254_v17  ;;  %v256_v18 = vsel %vm247_vm3, %v254_v17, 0.0 }
  0xd1   : > { %v257_v19 = vrot.slane %v256_v18, 4 }
  0xd3   : > { %v258_v20 = vadd.f32 %v257_v19, %v256_v18 }
  0xd5   : > { %v259_v21 = vrot.slane %v258_v20, 2 }
  0xd7   : > { %v260_v22 = vadd.f32 %v259_v21, %v258_v20 }
  0xd9   : > { %v261_v23 = vrot.slane %v260_v22, 1 }
  0xdb   : > { %v262_v24 = vadd.f32 %v261_v23, %v260_v22 }
  0xdd   : > { %v264_v25 = vmul.f32 0.5, %v262_v24 }
  0xdf   : > { %v265_v26 = vsub.f32 %v254_v17, %v264_v25 }
  0xe1   : > { %v266_v27 = vmul.f32 %v265_v26, %v265_v26 }
  0xe3   : > { %v267_v28 = vsel %vm247_vm3, %v266_v27, 0.0 }
  0xe4   : > { %v268_v29 = vrot.slane %v267_v28, 4 }
  0xe6   : > { %v269_v30 = vadd.f32 %v268_v29, %v267_v28 }
  0xe8   : > { %v270_v31 = vrot.slane %v269_v30, 2 }
  0xea   : > { %v271_v32 = vadd.f32 %v270_v31, %v269_v30 }
  0xec   : > { %v272_v33 = vrot.slane %v271_v32, 1 }
  0xee   : > { %v273_v34 = vadd.f32 %v272_v33, %v271_v32 }
  0xf0   : > { %v274_v35 = vmul.f32 0.5, %v273_v34 }
  0xf2   : > { %v275_v36 = vadd.f32 1e-05, %v274_v35 }
  0xf4   : > { %484 = vrsqrt.f32 %v275_v36 }
 0x101   : > { %v485_v39 = vpop.eup %484 }
 0x102   : > { %v278_v40 = vmul.f32 %v485_v39, %v277_v37 }
 0x104   : > { %v282_v41 = vrot.slane %v278_v40, %v281_v38 }
 0x106   : > { %v283_v42 = vmul.f32 %v282_v41, %v265_v26 }
 0x108   : > { %284 = vst.msk [vmem:[#allocation6] sm:$0x3] %vm247_vm3, %v283_v42 }
 0x109 PF: > { %p738_p9 = scmp.eq.s32.totalorder %s395_s18, 1  ;;  %s627_s29 = smov [#allocation5]  }
 0x10a   : > { %s294_s30 = sshll.u32 %s627_s29, 4  ;;  %s628_s4 = smov [#allocation6]   ;;  %s295_s30 = int_to_ptr.vmem [resolvable:$true] %s294_s30 }
 0x10b   : > { %s307_s5 = sshll.u32 %s628_s4, 4  ;;  %s514_s6 = scalar_lea.vmem %s295_s30, 32  ;;  %s308_s5 = int_to_ptr.vmem [resolvable:$true] %s307_s5 }
 0x10c   : > { %p515_p10 = scmp.ne.s32.totalorder %s295_s30, %s514_s6  ;;  %p521_p13 = scmp.lt.s32.totalorder %s295_s30, %s295_s30 }
 0x10d   : > { %p522_p0 = scmp.lt.s32.totalorder %s514_s6, %s514_s6 }
 0x10e   : > { %p516_p11 = pnand %p515_p10, %p738_p9 }
 0x10f   : > { %p523_p1 = por %p522_p0, %p521_p13 }
 0x110   : > { %p517_p12 = pneg %p516_p11 }
 0x112   : > { %p524_p2 = pnand %p523_p1, %p517_p12 }
 0x114   : > { %527 = shalt.err (!%p524_p2)
}
 0x115   : > { %414 = dma.vmem_to_hbm [thread:$0]  (%p738_p9), %s295_s30, 32, %s784_s2, [#allocation4]  }
 0x116   : > { %s538_s8 = scalar_lea.vmem %s308_s5, 32  ;;  %p545_p6 = scmp.lt.s32.totalorder %s308_s5, %s308_s5 }
 0x117   : > { %p539_p3 = scmp.ne.s32.totalorder %s308_s5, %s538_s8  ;;  %p546_p8 = scmp.lt.s32.totalorder %s538_s8, %s538_s8 }
 0x119   : > { %p540_p4 = pnand %p539_p3, %p738_p9  ;;  %p547_p7 = por %p546_p8, %p545_p6 }
 0x11b   : > { %p541_p5 = pneg %p540_p4 }
 0x11d   : > { %p548_p10 = pnand %p547_p7, %p541_p5 }
 0x11f   : > { %551 = shalt.err (!%p548_p10)
}
 0x120   : > { %416 = dma.vmem_to_hbm [thread:$0]  (%p738_p9), %s308_s5, 32, %s785_s3, [#allocation7]  }
 0x121   : > { %591 = dma.done.wait (%p738_p9), [#allocation4], 32  }
 0x122   : > { %593 = vsyncadd (%p738_p9), [#allocation4], 4294967264 }
 0x123   : > { %595 = dma.done.wait (%p738_p9), [#allocation7], 32  }
 0x124   : > { %597 = vsyncadd (%p738_p9), [#allocation7], 4294967264 }
 0x125 PF: > { %s19_s17 = sadd.s32 1, %s620_s17   ;;  %s790_s12 = smov %s604_s13 }
 0x126   : > { %p16_p11 = scmp.ge.s32.totalorder %s19_s17, 4   ;;  %s791_s13 = smov %s608_s14 }
 0x127   : > { %s792_s14 = smov %s700_s24  ;;  %s793_s15 = smov %s616_s16 }
 0x128   : > { %s794_s16 = smov %s796_s19  ;;  %18 = sbr.rel (!%p16_p11) target bundleno = 6 (0x6), region = 86 }
 0x12d   :  { %324 = vsyncpa [#allocation3], 1 }
 0x12e   :  { %326 = vsyncpa [#allocation3 + $0x1], 1 }
 0x12f   :  { %327 = vsyncpa [#allocation4], 1 }
 0x130   :  { %329 = vsyncpa [#allocation4 + $0x1], 1 }
 0x131   :  { %330 = vsyncpa [#allocation7], 1 }

</bundles_post_ra>
